<compile_context>
chip_gen: v5e
topology: v5e:2x2
jax: 0.10.0
libtpu: 0.0.40
codegen_flags: <defaults>
</compile_context>

<pallas_src>
import jax
import jax.numpy as jnp
from jax import lax
from jax.experimental import pallas as pl
from jax.experimental.pallas import tpu as pltpu

NUM_BINS = 256
LANE = 512                       # lane-dense slab width (4 lane groups)
GROUP = 8                        # rows per inner-loop step (one full sublane group)
MAX_HIST_BLOCK_ROWS = 256        # 256 x 512 x f32 = 512 KiB per block
MAX_INTERP_BLOCK_ROWS = 1024     # 1024 x 512 x f32 = 2 MiB per block


def _compute_dtype():
    """bf16 compares only on chips with a bf16 VPU (v6e / v7x).

    Compared values are small integers (0..255) plus a -1 sentinel, so equality is
    exact in either dtype; this is a pure performance switch (f32 on v5e).
    """
    try:
        kind = jax.devices()[0].device_kind.lower()
    except Exception:
        return jnp.float32
    if ("v6" in kind) or ("v7" in kind) or ("7x" in kind):
        return jnp.bfloat16
    return jnp.float32


def _round_up(a, b):
    return ((a + b - 1) // b) * b


# ----------------------------- kernel 1: histogram ---------------------------
def _make_hist_kernel(block_rows, steps, total_rows, cdt):
    n_groups = block_rows // GROUP

    def kernel(x_ref, hist_ref):
        # Output block is the (16,16) accumulator, resident across the "arbitrary" axis.
        @pl.when(pl.program_id(1) == 0)
        def _init():
            hist_ref[...] = jnp.zeros_like(hist_ref)

        # Hoisted constants (broadcasts are not CSE'd inside loops).
        iota16 = lax.broadcasted_iota(jnp.int32, (16, 1), 0).astype(cdt)
        iota8 = lax.broadcasted_iota(jnp.int32, (GROUP, 1), 0)
        # Unclamped linear block index: the BlockSpec index_map clamps steps past the
        # last real block onto it, and this row offset masks those duplicates out.
        row0 = (pl.program_id(0) * steps + pl.program_id(1)) * block_rows

        def group_body(g, acc):
            base = pl.multiple_of(g * GROUP, GROUP)
            v = x_ref[pl.ds(base, GROUP), :].astype(jnp.float32)     # (8, LANE), unmasked vld
            row_ok = (row0 + base + iota8) < total_rows              # ragged tail / dup block
            ok = (v >= 0.0) & (v <= 1.0) & row_ok                    # torch.histc range
            idx = jnp.clip(jnp.floor(v * float(NUM_BINS)),
                           0.0, float(NUM_BINS - 1))                 # v==1 -> bin 255
            hi = jnp.floor(idx * (1.0 / 16.0))                       # 0..15
            lo = idx - 16.0 * hi                                     # 0..15
            hi = jnp.where(ok, hi, -1.0).astype(cdt)                 # sentinel: no bin
            lo = lo.astype(cdt)
            part = acc
            for r in range(GROUP):                                   # unrolled inner 8
                oh_hi = (hi[r:r + 1, :] == iota16).astype(cdt)       # (16, LANE)
                oh_lo = (lo[r:r + 1, :] == iota16).astype(cdt)       # (16, LANE)
                # hist_tile[h, l] += #{n : hi(n)==h and lo(n)==l}, reduced on the MXU.
                part = part + lax.dot_general(
                    oh_hi, oh_lo, (((1,), (1,)), ((), ())),
                    preferred_element_type=jnp.float32)              # (16, 16)
            return part
            # TODO(synk): on v7x the per-row pop+add could use the MRB via
            # pltpu.matmul_push_rhs / matmul_acc_lhs / matmul_pop (v7x-only, modest).

        acc = lax.fori_loop(0, n_groups, group_body,
                            jnp.zeros((16, 16), jnp.float32))
        hist_ref[...] += acc

    return kernel


# --------------------------- kernel 2: interpolation -------------------------
def _make_interp_kernel(block_rows):
    n_groups = block_rows // GROUP

    def kernel(x_ref, tab_ref, o_ref):
        # tab rows  0:16 : tab[j, k] = cdf[16*k + j]
        # tab rows 16:32 : tab[16+j, k] = cdf[min(16*k+j+1, 255)] - cdf[16*k+j]
        tab = tab_ref[...]                                           # (32, 16) f32
        iota16 = lax.broadcasted_iota(jnp.int32, (16, 1), 0).astype(jnp.float32)

        def group_body(g, carry):
            base = pl.multiple_of(g * GROUP, GROUP)
            v = x_ref[pl.ds(base, GROUP), :].astype(jnp.float32)     # (8, LANE), unmasked vld
            vc = jnp.clip(v, 0.0, float(NUM_BINS - 1))
            knot = jnp.floor(vc)                                     # i = 0..255
            frac = vc - knot
            hi = jnp.floor(knot * (1.0 / 16.0))                      # 0..15
            lo = knot - 16.0 * hi                                    # 0..15
            out_rows = []
            for r in range(GROUP):                                   # unrolled inner 8
                # Two-level MXU gather: all 16 candidate cdf values (and forward
                # differences) of block `hi`, then a 16-way select+reduce. Kept in
                # f32 so the cdf lookup accuracy is not degraded.
                oh_hi = (hi[r:r + 1, :] == iota16).astype(jnp.float32)   # (16, LANE)
                oh_lo = (lo[r:r + 1, :] == iota16)                       # (16, LANE) bool
                gath = jnp.dot(tab, oh_hi,
                               preferred_element_type=jnp.float32)       # (32, LANE)
                cdf_i = jnp.sum(jnp.where(oh_lo, gath[:16, :], 0.0),
                                axis=0, keepdims=True)                   # cdf[i]
                dlt_i = jnp.sum(jnp.where(oh_lo, gath[16:, :], 0.0),
                                axis=0, keepdims=True)                   # cdf[i+1]-cdf[i]
                out_rows.append(cdf_i + frac[r:r + 1, :] * dlt_i)
            # Single unmasked (8, LANE) store per group.
            o_ref[pl.ds(base, GROUP), :] = jnp.concatenate(
                out_rows, axis=0).astype(o_ref.dtype)
            return carry

        lax.fori_loop(0, n_groups, group_body, 0)

    return kernel


# --------------------------------- wrapper -----------------------------------
def histogram_equalization(x):
    n = x.size
    cdt = _compute_dtype()

    rows = pl.cdiv(n, LANE)
    flat = x.reshape(-1).astype(jnp.float32)
    padded = (rows * LANE) != n
    if padded:
        # TODO(synk): a ragged last row needs one pad copy to form the (rows, LANE)
        # slab; pad values (-1) fall outside the histc range so they add nothing.
        flat = jnp.concatenate(
            [flat, jnp.full((rows * LANE - n,), -1.0, jnp.float32)])
    x2d = flat.reshape(rows, LANE)

    # ---- kernel 1: per-core partial (16,16) histogram tiles ------------------
    br_h = min(MAX_HIST_BLOCK_ROWS, _round_up(rows, GROUP))
    nb_h = pl.cdiv(rows, br_h)
    n_cores = 2 if nb_h >= 2 else 1          # leading "parallel" axis (megacore split)
    steps = pl.cdiv(nb_h, n_cores)
    # TODO(synk): on v7x switch the leading axis to pltpu.CORE_PARALLEL if profiling
    # shows the plain "parallel" axis is not actually sharded across the 2 TCs.

    hist_cost = pl.CostEstimate(
        flops=(2 * 2 * 16 * 16 + 40) * rows * LANE,
        transcendentals=0,
        bytes_accessed=4 * rows * LANE + 4 * n_cores * NUM_BINS)

    parts = pl.pallas_call(
        _make_hist_kernel(br_h, steps, rows, cdt),
        out_shape=jax.ShapeDtypeStruct((n_cores * 16, 16), jnp.float32),
        grid=(n_cores, steps),
        in_specs=[pl.BlockSpec(
            (br_h, LANE),
            lambda p, g: (jnp.minimum(p * steps + g, nb_h - 1), 0))],
        out_specs=pl.BlockSpec((16, 16), lambda p, g: (p, 0)),
        compiler_params=pltpu.CompilerParams(
            dimension_semantics=("parallel", "arbitrary"),
            vmem_limit_bytes=32 * 1024 * 1024),
        cost_estimate=hist_cost,
    )(x2d)

    # ---- 256-element CDF glue (not the hot path) -----------------------------
    hist = parts.reshape(n_cores, 16, 16).sum(axis=0).reshape(NUM_BINS)
    cdf = jnp.cumsum(hist)
    denom = cdf.max() - cdf.min()
    denom = jnp.where(denom > 0.0, denom, 1.0)      # guard constant inputs (no NaN)
    cdf = (cdf - cdf.min()) / denom
    cdf_next = jnp.concatenate([cdf[1:], cdf[-1:]])       # cdf[min(i+1, 255)]
    t_val = cdf.reshape(16, 16)                           # [hi, lo] -> cdf[16*hi+lo]
    t_dif = (cdf_next - cdf).reshape(16, 16)
    tab = jnp.concatenate([t_val.T, t_dif.T], axis=0)     # (32, 16): tab[j,k]=cdf[16k+j]

    # ---- kernel 2: exact piecewise-linear np.interp lookup --------------------
    br_i = min(MAX_INTERP_BLOCK_ROWS, _round_up(rows, GROUP))
    nb_i = pl.cdiv(rows, br_i)

    interp_cost = pl.CostEstimate(
        flops=(2 * 32 * 16 + 40) * rows * LANE,
        transcendentals=0,
        bytes_accessed=8 * rows * LANE)

    out2d = pl.pallas_call(
        _make_interp_kernel(br_i),
        out_shape=jax.ShapeDtypeStruct((rows, LANE), jnp.float32),
        grid=(nb_i,),
        in_specs=[pl.BlockSpec((br_i, LANE), lambda g: (g, 0)),
                  pl.BlockSpec((2 * 16, 16), lambda g: (0, 0))],
        out_specs=pl.BlockSpec((br_i, LANE), lambda g: (g, 0)),
        compiler_params=pltpu.CompilerParams(
            dimension_semantics=("parallel",),
            vmem_limit_bytes=32 * 1024 * 1024),
        cost_estimate=interp_cost,
    )(x2d, tab)

    out_flat = out2d.reshape(-1)
    if padded:
        out_flat = out_flat[:n]
    return out_flat.reshape(x.shape).astype(x.dtype)


# ------------------------------ pure-JAX reference ---------------------------
def reference(x):
    flat = x.reshape(-1).astype(jnp.float32)
    in_range = (flat >= 0.0) & (flat <= 1.0)
    bins = jnp.clip(jnp.floor(flat * NUM_BINS), 0, NUM_BINS - 1).astype(jnp.int32)
    hist = jnp.zeros((NUM_BINS,), jnp.float32).at[bins].add(
        jnp.where(in_range, 1.0, 0.0))
    cdf = jnp.cumsum(hist)
    cdf = (cdf - cdf.min()) / (cdf.max() - cdf.min())
    out = jnp.interp(flat, jnp.arange(NUM_BINS, dtype=jnp.float32), cdf)
    return out.reshape(x.shape).astype(x.dtype)


if __name__ == "__main__":
    key = jax.random.PRNGKey(0)

    # lane-aligned case (n % LANE == 0): no wrapper pad / slice at all
    x1 = jax.random.uniform(key, (2, 4, 16, 16), dtype=jnp.float32)
    out1 = jax.block_until_ready(histogram_equalization(x1))
    ref1 = reference(x1)
    assert out1.shape == x1.shape and out1.dtype == x1.dtype
    err1 = float(jnp.max(jnp.abs(out1 - ref1)))
    assert err1 < 5e-3, err1

    # ragged case (n % LANE != 0): exercises the pad path + in-kernel row masking
    x2 = jax.random.uniform(jax.random.PRNGKey(1), (2, 3, 24, 24), dtype=jnp.float32)
    out2 = jax.block_until_ready(histogram_equalization(x2))
    ref2 = reference(x2)
    assert out2.shape == x2.shape and out2.dtype == x2.dtype
    err2 = float(jnp.max(jnp.abs(out2 - ref2)))
    assert err2 < 5e-3, err2

    print("KERNEL_OK")
</pallas_src>

<mosaic_0001>
module attributes {stable_mosaic.version = 11 : i64} {
  func.func @kernel(%arg0: i32, %arg1: i32, %arg2: memref<8x512xf32, #tpu.memory_space<vmem>>, %arg3: memref<16x16xf32, #tpu.memory_space<vmem>>) attributes {dimension_semantics = [#tpu.dimension_semantics<parallel>, #tpu.dimension_semantics<arbitrary>], iteration_bounds = array<i64: 1, 1>, scalar_prefetch = 0 : i64, scratch_operands = 0 : i64, tpu.core_type = #tpu.core_type<tc>, window_params = [{transform_indices = @transform_0, window_bounds = array<i64: 8, 512>}, {transform_indices = @transform_1, window_bounds = array<i64: 16, 16>}]} {
    %c0_i32 = arith.constant 0 : i32
    %0 = arith.cmpi eq, %arg1, %c0_i32 : i32
    %1 = arith.extui %0 : i1 to i32
    %c0_i32_0 = arith.constant 0 : i32
    %2 = arith.cmpi ne, %1, %c0_i32_0 : i32
    scf.if %2 {
      %cst_24 = arith.constant 0.000000e+00 : f32
      %156 = vector.broadcast %cst_24 : f32 to vector<16x16xf32>
      %c0_25 = arith.constant 0 : index
      %c0_26 = arith.constant 0 : index
      %157 = vector.load %arg3[%c0_25, %c0_26] : memref<16x16xf32, #tpu.memory_space<vmem>>, vector<16x16xf32>
      tpu.vector_store %arg3[%c0_25, %c0_26], %156 {strides = array<i32>} : memref<16x16xf32, #tpu.memory_space<vmem>>, vector<16x16xf32>,
    } else {
    }
    %3 = tpu.iota {dimensions = array<i32: 0>} : vector<16x1xi32>
    %4 = arith.sitofp %3 : vector<16x1xi32> to vector<16x1xf32>
    %5 = tpu.iota {dimensions = array<i32: 0>} : vector<8x1xi32>
    %c1_i32 = arith.constant 1 : i32
    %6 = arith.muli %arg0, %c1_i32 : i32
    %7 = arith.addi %6, %arg1 : i32
    %c8_i32 = arith.constant 8 : i32
    %8 = arith.muli %7, %c8_i32 : i32
    %cst = arith.constant 0.000000e+00 : f32
    %9 = vector.broadcast %cst : f32 to vector<16x16xf32>
    %c0_i32_1 = arith.constant 0 : i32
    %c8_i32_2 = arith.constant 8 : i32
    %10 = arith.muli %c0_i32_1, %c8_i32_2 : i32
    %11 = tpu.assume_multiple %10, 8 : i32
    %12 = arith.index_cast %11 : i32 to index
    %c0 = arith.constant 0 : index
    %13 = vector.load %arg2[%12, %c0] : memref<8x512xf32, #tpu.memory_space<vmem>>, vector<8x512xf32>
    %14 = arith.addi %8, %11 : i32
    %15 = vector.broadcast %14 : i32 to vector<8x1xi32>
    %16 = arith.addi %15, %5 : vector<8x1xi32>
    %c4_i32 = arith.constant 4 : i32
    %17 = vector.broadcast %c4_i32 : i32 to vector<8x1xi32>
    %18 = arith.cmpi slt, %16, %17 : vector<8x1xi32>
    %cst_3 = arith.constant 0.000000e+00 : f32
    %19 = vector.broadcast %cst_3 : f32 to vector<8x512xf32>
    %20 = arith.cmpf oge, %13, %19 : vector<8x512xf32>
    %cst_4 = arith.constant 1.000000e+00 : f32
    %21 = vector.broadcast %cst_4 : f32 to vector<8x512xf32>
    %22 = arith.cmpf ole, %13, %21 : vector<8x512xf32>
    %23 = arith.andi %20, %22 : vector<8x512xi1>
    %24 = vector.broadcast %18 : vector<8x1xi1> to vector<8x512xi1>
    %25 = arith.andi %23, %24 : vector<8x512xi1>
    %cst_5 = arith.constant 2.560000e+02 : f32
    %26 = vector.broadcast %cst_5 : f32 to vector<8x512xf32>
    %27 = arith.mulf %13, %26 : vector<8x512xf32>
    %28 = math.floor %27 : vector<8x512xf32>
    %cst_6 = arith.constant 0.000000e+00 : f32
    %cst_7 = arith.constant 2.550000e+02 : f32
    %29 = vector.broadcast %cst_6 : f32 to vector<8x512xf32>
    %30 = arith.maximumf %29, %28 : vector<8x512xf32>
    %31 = vector.broadcast %cst_7 : f32 to vector<8x512xf32>
    %32 = arith.minimumf %31, %30 : vector<8x512xf32>
    %cst_8 = arith.constant 6.250000e-02 : f32
    %33 = vector.broadcast %cst_8 : f32 to vector<8x512xf32>
    %34 = arith.mulf %32, %33 : vector<8x512xf32>
    %35 = math.floor %34 : vector<8x512xf32>
    %cst_9 = arith.constant 1.600000e+01 : f32
    %36 = vector.broadcast %cst_9 : f32 to vector<8x512xf32>
    %37 = arith.mulf %36, %35 : vector<8x512xf32>
    %38 = arith.subf %32, %37 : vector<8x512xf32>
    %cst_10 = arith.constant -1.000000e+00 : f32
    %39 = vector.broadcast %cst_10 : f32 to vector<8x512xf32>
    %40 = arith.select %25, %35, %39 : vector<8x512xi1>, vector<8x512xf32>
    %41 = vector.extract_strided_slice %40 {offsets = [0, 0], sizes = [1, 512], strides = [1, 1]} : vector<8x512xf32> to vector<1x512xf32>
    %42 = vector.broadcast %41 : vector<1x512xf32> to vector<16x512xf32>
    %43 = vector.broadcast %4 : vector<16x1xf32> to vector<16x512xf32>
    %44 = arith.cmpf oeq, %42, %43 : vector<16x512xf32>
    %45 = arith.extui %44 : vector<16x512xi1> to vector<16x512xi32>
    %46 = arith.sitofp %45 : vector<16x512xi32> to vector<16x512xf32>
    %47 = vector.extract_strided_slice %38 {offsets = [0, 0], sizes = [1, 512], strides = [1, 1]} : vector<8x512xf32> to vector<1x512xf32>
    %48 = vector.broadcast %47 : vector<1x512xf32> to vector<16x512xf32>
    %49 = vector.broadcast %4 : vector<16x1xf32> to vector<16x512xf32>
    %50 = arith.cmpf oeq, %48, %49 : vector<16x512xf32>
    %51 = arith.extui %50 : vector<16x512xi1> to vector<16x512xi32>
    %52 = arith.sitofp %51 : vector<16x512xi32> to vector<16x512xf32>
    %cst_11 = arith.constant dense<0.000000e+00> : vector<16x16xf32>
    %53 = tpu.matmul %46, %52, %cst_11 {dimension_numbers = #tpu.dot_dimension_numbers<[1], [1], [0], [0], [0, 0, 1, 0], [], []>} : vector<16x512xf32>, vector<16x512xf32>, vector<16x16xf32> -> vector<16x16xf32>
    %54 = arith.addf %9, %53 : vector<16x16xf32>
    %55 = vector.extract_strided_slice %40 {offsets = [1, 0], sizes = [1, 512], strides = [1, 1]} : vector<8x512xf32> to vector<1x512xf32>
    %56 = vector.broadcast %55 : vector<1x512xf32> to vector<16x512xf32>
    %57 = vector.broadcast %4 : vector<16x1xf32> to vector<16x512xf32>
    %58 = arith.cmpf oeq, %56, %57 : vector<16x512xf32>
    %59 = arith.extui %58 : vector<16x512xi1> to vector<16x512xi32>
    %60 = arith.sitofp %59 : vector<16x512xi32> to vector<16x512xf32>
    %61 = vector.extract_strided_slice %38 {offsets = [1, 0], sizes = [1, 512], strides = [1, 1]} : vector<8x512xf32> to vector<1x512xf32>
    %62 = vector.broadcast %61 : vector<1x512xf32> to vector<16x512xf32>
    %63 = vector.broadcast %4 : vector<16x1xf32> to vector<16x512xf32>
    %64 = arith.cmpf oeq, %62, %63 : vector<16x512xf32>
    %65 = arith.extui %64 : vector<16x512xi1> to vector<16x512xi32>
    %66 = arith.sitofp %65 : vector<16x512xi32> to vector<16x512xf32>
    %cst_12 = arith.constant dense<0.000000e+00> : vector<16x16xf32>
    %67 = tpu.matmul %60, %66, %cst_12 {dimension_numbers = #tpu.dot_dimension_numbers<[1], [1], [0], [0], [0, 0, 1, 0], [], []>} : vector<16x512xf32>, vector<16x512xf32>, vector<16x16xf32> -> vector<16x16xf32>
    %68 = arith.addf %54, %67 : vector<16x16xf32>
    %69 = vector.extract_strided_slice %40 {offsets = [2, 0], sizes = [1, 512], strides = [1, 1]} : vector<8x512xf32> to vector<1x512xf32>
    %70 = vector.broadcast %69 : vector<1x512xf32> to vector<16x512xf32>
    %71 = vector.broadcast %4 : vector<16x1xf32> to vector<16x512xf32>
    %72 = arith.cmpf oeq, %70, %71 : vector<16x512xf32>
    %73 = arith.extui %72 : vector<16x512xi1> to vector<16x512xi32>
    %74 = arith.sitofp %73 : vector<16x512xi32> to vector<16x512xf32>
    %75 = vector.extract_strided_slice %38 {offsets = [2, 0], sizes = [1, 512], strides = [1, 1]} : vector<8x512xf32> to vector<1x512xf32>
    %76 = vector.broadcast %75 : vector<1x512xf32> to vector<16x512xf32>
    %77 = vector.broadcast %4 : vector<16x1xf32> to vector<16x512xf32>
    %78 = arith.cmpf oeq, %76, %77 : vector<16x512xf32>
    %79 = arith.extui %78 : vector<16x512xi1> to vector<16x512xi32>
    %80 = arith.sitofp %79 : vector<16x512xi32> to vector<16x512xf32>
    %cst_13 = arith.constant dense<0.000000e+00> : vector<16x16xf32>
    %81 = tpu.matmul %74, %80, %cst_13 {dimension_numbers = #tpu.dot_dimension_numbers<[1], [1], [0], [0], [0, 0, 1, 0], [], []>} : vector<16x512xf32>, vector<16x512xf32>, vector<16x16xf32> -> vector<16x16xf32>
    %82 = arith.addf %68, %81 : vector<16x16xf32>
    %83 = vector.extract_strided_slice %40 {offsets = [3, 0], sizes = [1, 512], strides = [1, 1]} : vector<8x512xf32> to vector<1x512xf32>
    %84 = vector.broadcast %83 : vector<1x512xf32> to vector<16x512xf32>
    %85 = vector.broadcast %4 : vector<16x1xf32> to vector<16x512xf32>
    %86 = arith.cmpf oeq, %84, %85 : vector<16x512xf32>
    %87 = arith.extui %86 : vector<16x512xi1> to vector<16x512xi32>
    %88 = arith.sitofp %87 : vector<16x512xi32> to vector<16x512xf32>
    %89 = vector.extract_strided_slice %38 {offsets = [3, 0], sizes = [1, 512], strides = [1, 1]} : vector<8x512xf32> to vector<1x512xf32>
    %90 = vector.broadcast %89 : vector<1x512xf32> to vector<16x512xf32>
    %91 = vector.broadcast %4 : vector<16x1xf32> to vector<16x512xf32>
    %92 = arith.cmpf oeq, %90, %91 : vector<16x512xf32>
    %93 = arith.extui %92 : vector<16x512xi1> to vector<16x512xi32>
    %94 = arith.sitofp %93 : vector<16x512xi32> to vector<16x512xf32>
    %cst_14 = arith.constant dense<0.000000e+00> : vector<16x16xf32>
    %95 = tpu.matmul %88, %94, %cst_14 {dimension_numbers = #tpu.dot_dimension_numbers<[1], [1], [0], [0], [0, 0, 1, 0], [], []>} : vector<16x512xf32>, vector<16x512xf32>, vector<16x16xf32> -> vector<16x16xf32>
    %96 = arith.addf %82, %95 : vector<16x16xf32>
    %97 = vector.extract_strided_slice %40 {offsets = [4, 0], sizes = [1, 512], strides = [1, 1]} : vector<8x512xf32> to vector<1x512xf32>
    %98 = vector.broadcast %97 : vector<1x512xf32> to vector<16x512xf32>
    %99 = vector.broadcast %4 : vector<16x1xf32> to vector<16x512xf32>
    %100 = arith.cmpf oeq, %98, %99 : vector<16x512xf32>
    %101 = arith.extui %100 : vector<16x512xi1> to vector<16x512xi32>
    %102 = arith.sitofp %101 : vector<16x512xi32> to vector<16x512xf32>
    %103 = vector.extract_strided_slice %38 {offsets = [4, 0], sizes = [1, 512], strides = [1, 1]} : vector<8x512xf32> to vector<1x512xf32>
    %104 = vector.broadcast %103 : vector<1x512xf32> to vector<16x512xf32>
    %105 = vector.broadcast %4 : vector<16x1xf32> to vector<16x512xf32>
    %106 = arith.cmpf oeq, %104, %105 : vector<16x512xf32>
    %107 = arith.extui %106 : vector<16x512xi1> to vector<16x512xi32>
    %108 = arith.sitofp %107 : vector<16x512xi32> to vector<16x512xf32>
    %cst_15 = arith.constant dense<0.000000e+00> : vector<16x16xf32>
    %109 = tpu.matmul %102, %108, %cst_15 {dimension_numbers = #tpu.dot_dimension_numbers<[1], [1], [0], [0], [0, 0, 1, 0], [], []>} : vector<16x512xf32>, vector<16x512xf32>, vector<16x16xf32> -> vector<16x16xf32>
    %110 = arith.addf %96, %109 : vector<16x16xf32>
    %111 = vector.extract_strided_slice %40 {offsets = [5, 0], sizes = [1, 512], strides = [1, 1]} : vector<8x512xf32> to vector<1x512xf32>
    %112 = vector.broadcast %111 : vector<1x512xf32> to vector<16x512xf32>
    %113 = vector.broadcast %4 : vector<16x1xf32> to vector<16x512xf32>
    %114 = arith.cmpf oeq, %112, %113 : vector<16x512xf32>
    %115 = arith.extui %114 : vector<16x512xi1> to vector<16x512xi32>
    %116 = arith.sitofp %115 : vector<16x512xi32> to vector<16x512xf32>
    %117 = vector.extract_strided_slice %38 {offsets = [5, 0], sizes = [1, 512], strides = [1, 1]} : vector<8x512xf32> to vector<1x512xf32>
    %118 = vector.broadcast %117 : vector<1x512xf32> to vector<16x512xf32>
    %119 = vector.broadcast %4 : vector<16x1xf32> to vector<16x512xf32>
    %120 = arith.cmpf oeq, %118, %119 : vector<16x512xf32>
    %121 = arith.extui %120 : vector<16x512xi1> to vector<16x512xi32>
    %122 = arith.sitofp %121 : vector<16x512xi32> to vector<16x512xf32>
    %cst_16 = arith.constant dense<0.000000e+00> : vector<16x16xf32>
    %123 = tpu.matmul %116, %122, %cst_16 {dimension_numbers = #tpu.dot_dimension_numbers<[1], [1], [0], [0], [0, 0, 1, 0], [], []>} : vector<16x512xf32>, vector<16x512xf32>, vector<16x16xf32> -> vector<16x16xf32>
    %124 = arith.addf %110, %123 : vector<16x16xf32>
    %125 = vector.extract_strided_slice %40 {offsets = [6, 0], sizes = [1, 512], strides = [1, 1]} : vector<8x512xf32> to vector<1x512xf32>
    %126 = vector.broadcast %125 : vector<1x512xf32> to vector<16x512xf32>
    %127 = vector.broadcast %4 : vector<16x1xf32> to vector<16x512xf32>
    %128 = arith.cmpf oeq, %126, %127 : vector<16x512xf32>
    %129 = arith.extui %128 : vector<16x512xi1> to vector<16x512xi32>
    %130 = arith.sitofp %129 : vector<16x512xi32> to vector<16x512xf32>
    %131 = vector.extract_strided_slice %38 {offsets = [6, 0], sizes = [1, 512], strides = [1, 1]} : vector<8x512xf32> to vector<1x512xf32>
    %132 = vector.broadcast %131 : vector<1x512xf32> to vector<16x512xf32>
    %133 = vector.broadcast %4 : vector<16x1xf32> to vector<16x512xf32>
    %134 = arith.cmpf oeq, %132, %133 : vector<16x512xf32>
    %135 = arith.extui %134 : vector<16x512xi1> to vector<16x512xi32>
    %136 = arith.sitofp %135 : vector<16x512xi32> to vector<16x512xf32>
    %cst_17 = arith.constant dense<0.000000e+00> : vector<16x16xf32>
    %137 = tpu.matmul %130, %136, %cst_17 {dimension_numbers = #tpu.dot_dimension_numbers<[1], [1], [0], [0], [0, 0, 1, 0], [], []>} : vector<16x512xf32>, vector<16x512xf32>, vector<16x16xf32> -> vector<16x16xf32>
    %138 = arith.addf %124, %137 : vector<16x16xf32>
    %139 = vector.extract_strided_slice %40 {offsets = [7, 0], sizes = [1, 512], strides = [1, 1]} : vector<8x512xf32> to vector<1x512xf32>
    %140 = vector.broadcast %139 : vector<1x512xf32> to vector<16x512xf32>
    %141 = vector.broadcast %4 : vector<16x1xf32> to vector<16x512xf32>
    %142 = arith.cmpf oeq, %140, %141 : vector<16x512xf32>
    %143 = arith.extui %142 : vector<16x512xi1> to vector<16x512xi32>
    %144 = arith.sitofp %143 : vector<16x512xi32> to vector<16x512xf32>
    %145 = vector.extract_strided_slice %38 {offsets = [7, 0], sizes = [1, 512], strides = [1, 1]} : vector<8x512xf32> to vector<1x512xf32>
    %146 = vector.broadcast %145 : vector<1x512xf32> to vector<16x512xf32>
    %147 = vector.broadcast %4 : vector<16x1xf32> to vector<16x512xf32>
    %148 = arith.cmpf oeq, %146, %147 : vector<16x512xf32>
    %149 = arith.extui %148 : vector<16x512xi1> to vector<16x512xi32>
    %150 = arith.sitofp %149 : vector<16x512xi32> to vector<16x512xf32>
    %cst_18 = arith.constant dense<0.000000e+00> : vector<16x16xf32>
    %151 = tpu.matmul %144, %150, %cst_18 {dimension_numbers = #tpu.dot_dimension_numbers<[1], [1], [0], [0], [0, 0, 1, 0], [], []>} : vector<16x512xf32>, vector<16x512xf32>, vector<16x16xf32> -> vector<16x16xf32>
    %152 = arith.addf %138, %151 : vector<16x16xf32>
    %c1_i32_19 = arith.constant 1 : i32
    %c0_20 = arith.constant 0 : index
    %c0_21 = arith.constant 0 : index
    %153 = vector.load %arg3[%c0_20, %c0_21] : memref<16x16xf32, #tpu.memory_space<vmem>>, vector<16x16xf32>
    %154 = arith.addf %153, %152 : vector<16x16xf32>
    %c0_22 = arith.constant 0 : index
    %c0_23 = arith.constant 0 : index
    %155 = vector.load %arg3[%c0_22, %c0_23] : memref<16x16xf32, #tpu.memory_space<vmem>>, vector<16x16xf32>
    tpu.vector_store %arg3[%c0_22, %c0_23], %154 {strides = array<i32>} : memref<16x16xf32, #tpu.memory_space<vmem>>, vector<16x16xf32>,
    return
  }
  func.func @transform_0(%arg0: i32, %arg1: i32) -> (i32, i32) {
    %c1_i32 = arith.constant 1 : i32
    %0 = arith.muli %arg0, %c1_i32 : i32
    %1 = arith.addi %0, %arg1 : i32
    %c0_i32 = arith.constant 0 : i32
    %2 = arith.minsi %1, %c0_i32 : i32
    %c0_i32_0 = arith.constant 0 : i32
    %c0_i32_1 = arith.constant 0 : i32
    return %2, %c0_i32_0 : i32, i32
  }
  func.func @transform_1(%arg0: i32, %arg1: i32) -> (i32, i32) {
    %c0_i32 = arith.constant 0 : i32
    %c0_i32_0 = arith.constant 0 : i32
    return %arg0, %c0_i32 : i32, i32
  }
}

</mosaic_0001>

<bundles_post_ra>
// kernel: tpu_custom_call.1
= control target key start
LH: loop header
LB: loop body
LE: loop exit
PB: predicated region body
PF: predicated region fallthrough
CT: control target
= control target key end

     0   :  { %6 = vsyncpa [#allocation3], 0  ;;  %s2258_s0 = inlined_call_operand.hbm [shape: f32[4,512], index: 0, kind: input, shape index: {}]   ;;  %s2259_s1 = inlined_call_operand.hbm [shape: f32[16,16], index: 1, kind: output, shape index: {}]  }
   0x1   :  { %7 = vsyncpa [#allocation4], 0 }
   0x2   :  { %19 = vsyncadd [#allocation3], 256  ;;  %s25_s8 = sshll.u32 %s2258_s0, 4  ;;  %s1814_s9 = smov [#allocation2]   ;;  %s26_s8 = int_to_ptr.hbm [resolvable:$true] %s25_s8 }
   0x3   :  { %s27_s10 = sshll.u32 %s1814_s9, 4  ;;  %s1815_s11 = smov 256   ;;  %s28_s10 = int_to_ptr.vmem [resolvable:$true] %s27_s10 }
   0x4   :  { %s1816_s12 = smov 16  }
   0x5   :  { %33 = dma.hbm_to_vmem [thread:$0]  %s26_s8, 256, %s28_s10, [#allocation3], %s1815_s11, %s1815_s11, %s1816_s12  }
   0x6   :  { %1810 = dma.done.wait [#allocation3], 512  }
   0x7   :  { %1811 = vsyncadd [#allocation3], 4294966784  ;;  %vm49_vm0 = vcmask 130048   ;;  %v52_v0 = vlaneseq  ;;  %v1817_v1 = vmov 0.0   ;;  %v1818_v3 = vmov 839922192  }
   0x8   :  { %50 = vst.msk [vmem:[#allocation5] sm:$0xff] %vm49_vm0, %v1817_v1  ;;  %v86_v4 = vunpack.c.l.s4 %v1818_v3  ;;  %v62_v6 = vld [vmem:[#allocation2] sm:$0xff]  ;;  %v63_v7 = vld [vmem:[#allocation2 + $0x8] sm:$0xff]  ;;  %v1819_v8 = vmov 0   ;;  %v1820_v48 = vmov 1.0   ;;  %s1822_s0 = smov [#allocation5]  }
   0x9   :  { %51 = vst.msk [vmem:[#allocation5 + $0x8] sm:$0xff] %vm49_vm0, %v1817_v1  ;;  %v53_v2 = vshrl.u32 %v52_v0, 7  ;;  %v99_v10 = vmul.f32 256.0, %v62_v6  ;;  %v100_v11 = vmul.f32 256.0, %v63_v7  ;;  %vm70_vm2 = vcmp.ge.f32.partialorder %v62_v6, 0.0  ;;  %s1478_s13 = sshll.u32 %s1822_s0, 4  ;;  %s1479_s13 = int_to_ptr.vmem [resolvable:$true] %s1478_s13 }
   0xa   :  { %v87_v5 = vunpack.c.0.s8 %v86_v4  ;;  %vm74_vm3 = vcmp.le.f32.partialorder %v62_v6, 1.0  ;;  %vm71_vm4 = vcmp.ge.f32.partialorder %v63_v7, 0.0  ;;  %vm75_vm5 = vcmp.le.f32.partialorder %v63_v7, 1.0  ;;  %s1480_s16 = sshll.u32 %s2259_s1, 4  ;;  %s1823_s17 = smov 128   ;;  %s1481_s16 = int_to_ptr.hbm [resolvable:$true] %s1480_s16 }
   0xb   :  { %vm69_vm1 = vcmp.lt.s32.totalorder %v53_v2, 4  ;;  %v103_v12 = vfloor.f32 %v99_v10  ;;  %v104_v13 = vfloor.f32 %v100_v11  ;;  %vm78_vm6 = vmand %vm70_vm2, %vm74_vm3  ;;  %v54_v23 = vadd.s32 8, %v53_v2  ;;  %v1961_v10 = vld [vmem:[#allocation2 + $0x18] sm:$0xff]  ;;  %s1824_s18 = smov 8  }
   0xc   :  { %v1840_v9 = vsel %vm69_vm1, 1, %v1819_v8  ;;  %vm79_vm8 = vmand %vm71_vm4, %vm75_vm5  ;;  %v1853_v31 = vcvt.s32.f32 %v53_v2 }
   0xd   :  { %v88_v14 = vperm.slane %v1840_v9, %v87_v5  ;;  %v107_v15 = vmax.f32 %v103_v12, 0.0  ;;  %v108_v16 = vmax.f32 %v104_v13, 0.0  ;;  %v1851_v30 = vcvt.s32.f32 %v54_v23 }
   0xf   :  { %v111_v17 = vmin.f32 %v107_v15, 255.0  ;;  %v112_v18 = vmin.f32 %v108_v16, 255.0  ;;  %vm93_vm7 = vcmp.ne.s32.totalorder %v88_v14, 0 }
  0x10   :  { %vm95_vm9 = vmand %vm78_vm6, %vm93_vm7 }
  0x11   :  { %v115_v19 = vmul.f32 0.0625, %v111_v17  ;;  %v116_v20 = vmul.f32 0.0625, %v112_v18  ;;  %vm96_vm10 = vmand %vm79_vm8, %vm93_vm7 }
  0x13   :  { %v119_v21 = vfloor.f32 %v115_v19  ;;  %v120_v22 = vfloor.f32 %v116_v20 }
  0x15   :  { %v123_v24 = vmul.f32 16.0, %v119_v21  ;;  %v124_v25 = vmul.f32 16.0, %v120_v22  ;;  %v1843_v26 = vsel %vm95_vm9, %v119_v21, -1.0  ;;  %v1849_v29 = vsel %vm96_vm10, %v120_v22, -1.0 }
  0x16   :  { %v211_v32 = vperm.slane %v1843_v26, 1  ;;  %v213_v37 = vperm.slane %v1849_v29, 1  ;;  %v212_v39 = vperm.slane %v1843_v26, 5  ;;  %v214_v40 = vperm.slane %v1849_v29, 5 }
  0x17   :  { %v1845_v27 = vsub.f32 %v111_v17, %v123_v24  ;;  %v1847_v28 = vsub.f32 %v112_v18, %v124_v25  ;;  %v137_v1 = vperm.slane %v1843_v26, 0  ;;  %v139_v2 = vperm.slane %v1849_v29, 0  ;;  %v1980_v18 = vld [vmem:[#allocation2 + $0x10] sm:$0xff] }
  0x18   :  { %v1872_v49 = vperm.slane %v211_v32, 1  ;;  %v1874_v50 = vperm.slane %v213_v37, 1  ;;  %v1876_v51 = vperm.slane %v212_v39, 1  ;;  %v1882_v53 = vperm.slane %v214_v40, 1 }
  0x19   :  { %v247_v33 = vperm.slane %v1845_v27, 1  ;;  %v249_v34 = vperm.slane %v1847_v28, 1  ;;  %v248_v35 = vperm.slane %v1845_v27, 5  ;;  %v250_v36 = vperm.slane %v1847_v28, 5 }
  0x1a   :  { %v177_v38 = vperm.slane %v1847_v28, 0  ;;  %v178_v46 = vperm.slane %v1847_v28, 4  ;;  %v175_v47 = vperm.slane %v1845_v27, 0  ;;  %v176_v54 = vperm.slane %v1845_v27, 4 }
  0x1b   :  { %v255_v41 = vperm.slane %v247_v33, 1  ;;  %v257_v42 = vperm.slane %v249_v34, 1  ;;  %v256_v43 = vperm.slane %v248_v35, 1  ;;  %v258_v44 = vperm.slane %v250_v36, 1 }
  0x1c   :  { %v185_v45 = vperm.slane %v177_v38, 0  ;;  %v186_v52 = vperm.slane %v178_v46, 0  ;;  %v183_v55 = vperm.slane %v175_v47, 0  ;;  %v184_v56 = vperm.slane %v176_v54, 0 }
  0x1d   :  { %vm263_vm11 = vcmp.eq.f32.partialorder %v255_v41, %v1851_v30  ;;  %vm265_vm12 = vcmp.eq.f32.partialorder %v257_v42, %v1851_v30  ;;  %vm264_vm13 = vcmp.eq.f32.partialorder %v256_v43, %v1851_v30  ;;  %vm266_vm14 = vcmp.eq.f32.partialorder %v258_v44, %v1851_v30 }
  0x1e   :  { %1527 = vmatpush.xpose.msk.msra.mxu0 %vm263_vm11, %v1820_v48  ;;  %1535 = vmatpush.xpose.msk.msra.mxu2 %vm265_vm12, %v1820_v48  ;;  %vm259_vm15 = vcmp.eq.f32.partialorder %v255_v41, %v1853_v31  ;;  %vm261_vm1 = vcmp.eq.f32.partialorder %v257_v42, %v1853_v31  ;;  %vm260_vm2 = vcmp.eq.f32.partialorder %v256_v43, %v1853_v31  ;;  %v505_v57 = vperm.slane %v1847_v28, 2 }
  0x1f   :  { %1531 = vmatpush.xpose.msk.msra.mxu1 %vm264_vm13, %v1820_v48  ;;  %1539 = vmatpush.xpose.msk.msra.mxu3 %vm266_vm14, %v1820_v48  ;;  %vm262_vm3 = vcmp.eq.f32.partialorder %v258_v44, %v1853_v31  ;;  %vm193_vm4 = vcmp.eq.f32.partialorder %v185_v45, %v1851_v30  ;;  %vm194_vm5 = vcmp.eq.f32.partialorder %v186_v52, %v1851_v30  ;;  %v506_v58 = vperm.slane %v1847_v28, 6 }
  0x20   :  { %vm223_vm6 = vcmp.eq.f32.partialorder %v1872_v49, %v1853_v31  ;;  %vm225_vm7 = vcmp.eq.f32.partialorder %v1874_v50, %v1853_v31  ;;  %vm224_vm8 = vcmp.eq.f32.partialorder %v1876_v51, %v1853_v31  ;;  %vm226_vm9 = vcmp.eq.f32.partialorder %v1882_v53, %v1853_v31 }
  0x21   :  { %vm191_vm10 = vcmp.eq.f32.partialorder %v183_v55, %v1851_v30  ;;  %vm192_vm11 = vcmp.eq.f32.partialorder %v184_v56, %v1851_v30  ;;  %vm189_vm12 = vcmp.eq.f32.partialorder %v185_v45, %v1853_v31  ;;  %vm190_vm13 = vcmp.eq.f32.partialorder %v186_v52, %v1853_v31 }
  0x22   :  { %1528 = vmatpush.xpose.msk.msra.mxu0 %vm259_vm15, %v1820_v48  ;;  %1536 = vmatpush.xpose.msk.msra.mxu2 %vm261_vm1, %v1820_v48  ;;  %v513_v59 = vperm.slane %v505_v57, 2  ;;  %v503_v60 = vperm.slane %v1845_v27, 2  ;;  %v504_v61 = vperm.slane %v1845_v27, 6  ;;  %v514_v62 = vperm.slane %v506_v58, 2 }
  0x23   :  { %1532 = vmatpush.xpose.msk.msra.mxu1 %vm260_vm2, %v1820_v48  ;;  %1540 = vmatpush.xpose.msk.msra.mxu3 %vm262_vm3, %v1820_v48  ;;  %vm187_vm15 = vcmp.eq.f32.partialorder %v183_v55, %v1853_v31  ;;  %vm188_vm1 = vcmp.eq.f32.partialorder %v184_v56, %v1853_v31  ;;  %v138_v3 = vperm.slane %v1843_v26, 4  ;;  %v140_v4 = vperm.slane %v1849_v29, 4 }
  0x24   :  { %vm521_vm14 = vcmp.eq.f32.partialorder %v513_v59, %v1851_v30  ;;  %v511_v63 = vperm.slane %v503_v60, 2  ;;  %v512_v0 = vperm.slane %v504_v61, 2  ;;  %vm522_vm2 = vcmp.eq.f32.partialorder %v514_v62, %v1851_v30 }
  0x25   :  { %1529 = vmatmul.msk.f32.vlgmr.msra.gmra.mxu0 %vm223_vm6, %v1820_v48  ;;  %1537 = vmatmul.msk.f32.vlgmr.msra.gmra.mxu2 %vm225_vm7, %v1820_v48  ;;  %vm229_vm6 = vcmp.eq.f32.partialorder %v1874_v50, %v1851_v30  ;;  %vm228_vm7 = vcmp.eq.f32.partialorder %v1876_v51, %v1851_v30  ;;  %v671_v5 = vperm.slane %v1847_v28, 3  ;;  %v672_v6 = vperm.slane %v1847_v28, 7 }
  0x26   :  { %1551 = vmatpush.xpose.msk.msrb.mxu2 %vm193_vm4, %v1820_v48  ;;  %1533 = vmatmul.msk.f32.vlgmr.msra.gmra.mxu1 %vm224_vm8, %v1820_v48  ;;  %vm519_vm3 = vcmp.eq.f32.partialorder %v511_v63, %v1851_v30  ;;  %vm520_vm4 = vcmp.eq.f32.partialorder %v512_v0, %v1851_v30  ;;  %vm230_vm8 = vcmp.eq.f32.partialorder %v1882_v53, %v1851_v30  ;;  %v669_v7 = vperm.slane %v1845_v27, 3 }
  0x27   :  { %1555 = vmatpush.xpose.msk.msrb.mxu3 %vm194_vm5, %v1820_v48  ;;  %1543 = vmatpush.xpose.msk.msrb.mxu0 %vm191_vm10, %v1820_v48  ;;  %vm227_vm5 = vcmp.eq.f32.partialorder %v1872_v49, %v1851_v30  ;;  %vm518_vm10 = vcmp.eq.f32.partialorder %v514_v62, %v1853_v31  ;;  %v670_v8 = vperm.slane %v1845_v27, 7  ;;  %v145_v11 = vperm.slane %v137_v1, 0 }
  0x28   :  { %1541 = vmatmul.msk.f32.vlgmr.msra.gmra.mxu3 %vm226_vm9, %v1820_v48  ;;  %1547 = vmatpush.xpose.msk.msrb.mxu1 %vm192_vm11, %v1820_v48  ;;  %vm517_vm9 = vcmp.eq.f32.partialorder %v513_v59, %v1853_v31  ;;  %vm515_vm11 = vcmp.eq.f32.partialorder %v511_v63, %v1853_v31  ;;  %v147_v12 = vperm.slane %v139_v2, 0  ;;  %v146_v13 = vperm.slane %v138_v3, 0 }
  0x29   :  { %v148_v14 = vperm.slane %v140_v4, 0  ;;  %v679_v15 = vperm.slane %v671_v5, 3  ;;  %v680_v16 = vperm.slane %v672_v6, 3  ;;  %v102_v17 = vmul.f32 256.0, %v1961_v10 }
  0x2a   :  { %1552 = vmatpush.xpose.msk.msrb.mxu2 %vm189_vm12, %v1820_v48  ;;  %vm516_vm12 = vcmp.eq.f32.partialorder %v512_v0, %v1853_v31  ;;  %v677_v19 = vperm.slane %v669_v7, 3  ;;  %v678_v20 = vperm.slane %v670_v8, 3  ;;  %v101_v22 = vmul.f32 256.0, %v1980_v18 }
  0x2b   :  { %1556 = vmatpush.xpose.msk.msrb.mxu3 %vm190_vm13, %v1820_v48  ;;  %1544 = vmatpush.xpose.msk.msrb.mxu0 %vm187_vm15, %v1820_v48  ;;  %vm149_vm13 = vcmp.eq.f32.partialorder %v145_v11, %v1853_v31  ;;  %vm150_vm15 = vcmp.eq.f32.partialorder %v146_v13, %v1853_v31  ;;  %v106_v21 = vfloor.f32 %v102_v17  ;;  %v469_v33 = vperm.slane %v1849_v29, 2 }
  0x2c   :  { %1548 = vmatpush.xpose.msk.msrb.mxu1 %vm188_vm1, %v1820_v48  ;;  %vm152_vm1 = vcmp.eq.f32.partialorder %v148_v14, %v1853_v31  ;;  %v105_v24 = vfloor.f32 %v101_v22  ;;  %v470_v34 = vperm.slane %v1849_v29, 6  ;;  %v467_v35 = vperm.slane %v1843_v26, 2 }
  0x2d   :  { %1530 = vmatmul.msk.f32.gmra.mxu0 %vm227_vm5, %v1820_v48  ;;  %1538 = vmatmul.msk.f32.gmra.mxu2 %vm229_vm6, %v1820_v48  ;;  %vm686_vm5 = vcmp.eq.f32.partialorder %v678_v20, %v1851_v30  ;;  %v110_v23 = vmax.f32 %v106_v21, 0.0  ;;  %vm153_vm6 = vcmp.eq.f32.partialorder %v145_v11, %v1851_v30  ;;  %v468_v36 = vperm.slane %v1843_v26, 6 }
  0x2e   :  { %1583 = vmatpush.xpose.msk.msra.mxu2 %vm521_vm14, %v1820_v48  ;;  %1534 = vmatmul.msk.f32.gmra.mxu1 %vm228_vm7, %v1820_v48  ;;  %vm151_vm14 = vcmp.eq.f32.partialorder %v147_v12, %v1853_v31  ;;  %v109_v27 = vmax.f32 %v105_v24, 0.0  ;;  %vm155_vm7 = vcmp.eq.f32.partialorder %v147_v12, %v1851_v30  ;;  %v477_v41 = vperm.slane %v469_v33, 2 }
  0x2f   :  { %1587 = vmatpush.xpose.msk.msra.mxu3 %vm522_vm2, %v1820_v48  ;;  %1575 = vmatpush.xpose.msk.msra.mxu0 %vm519_vm3, %v1820_v48  ;;  %vm687_vm2 = vcmp.eq.f32.partialorder %v679_v15, %v1851_v30  ;;  %vm688_vm3 = vcmp.eq.f32.partialorder %v680_v16, %v1851_v30  ;;  %v114_v25 = vmin.f32 %v110_v23, 255.0  ;;  %v478_v42 = vperm.slane %v470_v34, 2 }
  0x30   :  { %1579 = vmatpush.xpose.msk.msra.mxu1 %vm520_vm4, %v1820_v48  ;;  %1542 = vmatmul.msk.f32.gmra.mxu3 %vm230_vm8, %v1820_v48  ;;  %vm685_vm4 = vcmp.eq.f32.partialorder %v677_v19, %v1851_v30  ;;  %vm683_vm8 = vcmp.eq.f32.partialorder %v679_v15, %v1853_v31  ;;  %v113_v32 = vmin.f32 %v109_v27, 255.0  ;;  %v475_v43 = vperm.slane %v467_v35, 2 }
  0x31   :  { %v2005_v28 = vmul.f32 0.0625, %v114_v25  ;;  %v476_v44 = vperm.slane %v468_v36, 2  ;;  %v1821_v55 = vmov 1985246804   ;;  %v635_v60 = vperm.slane %v1849_v29, 3 }
  0x32   :  { %1584 = vmatpush.xpose.msk.msra.mxu2 %vm517_vm9, %v1820_v48  ;;  %vm684_vm9 = vcmp.eq.f32.partialorder %v680_v16, %v1853_v31  ;;  %v2016_v38 = vmul.f32 0.0625, %v113_v32  ;;  %v90_v56 = vunpack.c.l.s4 %v1821_v55  ;;  %v633_v61 = vperm.slane %v1843_v26, 3 }
  0x33   :  { %1588 = vmatpush.xpose.msk.msra.mxu3 %vm518_vm10, %v1820_v48  ;;  %1576 = vmatpush.xpose.msk.msra.mxu0 %vm515_vm11, %v1820_v48  ;;  %vm681_vm10 = vcmp.eq.f32.partialorder %v677_v19, %v1853_v31  ;;  %vm682_vm11 = vcmp.eq.f32.partialorder %v678_v20, %v1853_v31  ;;  %v122_v37 = vfloor.f32 %v2005_v28  ;;  %v636_v62 = vperm.slane %v1849_v29, 7 }
  0x34   :  { %1580 = vmatpush.xpose.msk.msra.mxu1 %vm516_vm12, %v1820_v48  ;;  %vm154_vm12 = vcmp.eq.f32.partialorder %v146_v13, %v1851_v30  ;;  %v121_v40 = vfloor.f32 %v2016_v38  ;;  %v91_v59 = vunpack.c.0.s8 %v90_v56  ;;  %v634_v63 = vperm.slane %v1843_v26, 7 }
  0x35   :  { %1545 = vmatmul.msk.f32.vlgmr.msrb.gmra.mxu0 %vm149_vm13, %v1820_v48  ;;  %1553 = vmatmul.msk.f32.vlgmr.msrb.gmra.mxu2 %vm151_vm14, %v1820_v48  ;;  %vm156_vm13 = vcmp.eq.f32.partialorder %v148_v14, %v1851_v30  ;;  %v126_v39 = vmul.f32 16.0, %v122_v37  ;;  %vm481_vm14 = vcmp.eq.f32.partialorder %v477_v41, %v1853_v31  ;;  %v643_v29 = vperm.slane %v635_v60, 3 }
  0x36   :  { %1549 = vmatmul.msk.f32.vlgmr.msrb.gmra.mxu1 %vm150_vm15, %v1820_v48  ;;  %1615 = vmatpush.xpose.msk.msrb.mxu2 %vm687_vm2, %v1820_v48  ;;  %v125_v46 = vmul.f32 16.0, %v121_v40  ;;  %vm482_vm15 = vcmp.eq.f32.partialorder %v478_v42, %v1853_v31  ;;  %vm480_vm2 = vcmp.eq.f32.partialorder %v476_v44, %v1853_v31  ;;  %v92_v0 = vperm.slane %v1840_v9, %v91_v59 }
  0x37   :  { %1607 = vmatpush.xpose.msk.msrb.mxu0 %vm685_vm4, %v1820_v48  ;;  %v2031_v45 = vsub.f32 %v114_v25, %v126_v39  ;;  %v641_v3 = vperm.slane %v633_v61, 3  ;;  %v644_v4 = vperm.slane %v636_v62, 3  ;;  %v642_v5 = vperm.slane %v634_v63, 3 }
  0x38   :  { %1557 = vmatmul.msk.f32.vlgmr.msrb.gmra.mxu3 %vm152_vm1, %v1820_v48  ;;  %1611 = vmatpush.xpose.msk.msrb.mxu1 %vm686_vm5, %v1820_v48  ;;  %v2037_v50 = vsub.f32 %v113_v32, %v125_v46  ;;  %vm479_vm1 = vcmp.eq.f32.partialorder %v475_v43, %v1853_v31 }
  0x39   :  { %1619 = vmatpush.xpose.msk.msrb.mxu3 %vm688_vm3, %v1820_v48  ;;  %v841_v47 = vperm.slane %v2031_v45, 0  ;;  %v842_v49 = vperm.slane %v2031_v45, 4  ;;  %v1007_v1 = vperm.slane %v2031_v45, 1  ;;  %v1008_v2 = vperm.slane %v2031_v45, 5 }
  0x3a   :  { %1616 = vmatpush.xpose.msk.msrb.mxu2 %vm683_vm8, %v1820_v48  ;;  %v839_v53 = vperm.slane %v2037_v50, 0  ;;  %v840_v54 = vperm.slane %v2037_v50, 4  ;;  %v1005_v26 = vperm.slane %v2037_v50, 1  ;;  %v1006_v9 = vperm.slane %v2037_v50, 5 }
  0x3b   :  { %1608 = vmatpush.xpose.msk.msrb.mxu0 %vm681_vm10, %v1820_v48  ;;  %v849_v51 = vperm.slane %v841_v47, 0  ;;  %v850_v52 = vperm.slane %v842_v49, 0  ;;  %v1015_v6 = vperm.slane %v1007_v1, 1  ;;  %v1016_v7 = vperm.slane %v1008_v2, 1 }
  0x3c   :  { %1612 = vmatpush.xpose.msk.msrb.mxu1 %vm682_vm11, %v1820_v48  ;;  %v847_v57 = vperm.slane %v839_v53, 0  ;;  %v848_v58 = vperm.slane %v840_v54, 0  ;;  %vm485_vm11 = vcmp.eq.f32.partialorder %v477_v41, %v1851_v30  ;;  %v1013_v8 = vperm.slane %v1005_v26, 1 }
  0x3d   :  { %1620 = vmatpush.xpose.msk.msrb.mxu3 %vm684_vm9, %v1820_v48  ;;  %1546 = vmatmul.msk.f32.gmra.mxu0 %vm153_vm6, %v1820_v48  ;;  %vm857_vm3 = vcmp.eq.f32.partialorder %v849_v51, %v1851_v30  ;;  %vm858_vm4 = vcmp.eq.f32.partialorder %v850_v52, %v1851_v30  ;;  %vm854_vm8 = vcmp.eq.f32.partialorder %v850_v52, %v1853_v31  ;;  %v1173_v17 = vperm.slane %v2031_v45, 2 }
  0x3e   :  { %1554 = vmatmul.msk.f32.gmra.mxu2 %vm155_vm7, %v1820_v48  ;;  %1550 = vmatmul.msk.f32.gmra.mxu1 %vm154_vm12, %v1820_v48  ;;  %vm855_vm5 = vcmp.eq.f32.partialorder %v847_v57, %v1851_v30  ;;  %vm856_vm6 = vcmp.eq.f32.partialorder %v848_v58, %v1851_v30  ;;  %vm853_vm7 = vcmp.eq.f32.partialorder %v849_v51, %v1853_v31  ;;  %v1171_v19 = vperm.slane %v2037_v50, 2 }
  0x3f   :  { %vm851_vm9 = vcmp.eq.f32.partialorder %v847_v57, %v1853_v31  ;;  %vm852_vm10 = vcmp.eq.f32.partialorder %v848_v58, %v1853_v31  ;;  %vm483_vm12 = vcmp.eq.f32.partialorder %v475_v43, %v1851_v30  ;;  %v1172_v20 = vperm.slane %v2037_v50, 6 }
  0x40   :  { %1558 = vmatmul.msk.f32.gmra.mxu3 %vm156_vm13, %v1820_v48  ;;  %vm486_vm13 = vcmp.eq.f32.partialorder %v478_v42, %v1851_v30  ;;  %v1181_v25 = vperm.slane %v1173_v17, 2  ;;  %v1179_v28 = vperm.slane %v1171_v19, 2  ;;  %v1340_v38 = vperm.slane %v2031_v45, 7 }
  0x41   :  { %v1180_v32 = vperm.slane %v1172_v20, 2  ;;  %v1337_v39 = vperm.slane %v2037_v50, 3 }
  0x42   :  { %v1348_v47 = vperm.slane %v1340_v38, 3 }
  0x43   :  { %v1345_v49 = vperm.slane %v1337_v39, 3 }
  0x45   :  { %1577 = vmatmul.msk.f32.vlgmr.msra.gmra.mxu0 %vm479_vm1, %v1820_v48  ;;  %vm77_vm1 = vcmp.le.f32.partialorder %v1961_v10, 1.0 }
  0x46   :  { %1585 = vmatmul.msk.f32.vlgmr.msra.gmra.mxu2 %vm481_vm14, %v1820_v48  ;;  %1581 = vmatmul.msk.f32.vlgmr.msra.gmra.mxu1 %vm480_vm2, %v1820_v48  ;;  %vm484_vm14 = vcmp.eq.f32.partialorder %v476_v44, %v1851_v30  ;;  %vm72_vm2 = vcmp.ge.f32.partialorder %v1980_v18, 0.0 }
  0x47   :  { %1647 = vmatpush.xpose.msk.msra.mxu2 %vm857_vm3, %v1820_v48  ;;  %1639 = vmatpush.xpose.msk.msra.mxu0 %vm855_vm5, %v1820_v48  ;;  %vm76_vm3 = vcmp.le.f32.partialorder %v1980_v18, 1.0  ;;  %v1174_v18 = vperm.slane %v2031_v45, 6 }
  0x48   :  { %1589 = vmatmul.msk.f32.vlgmr.msra.gmra.mxu3 %vm482_vm15, %v1820_v48  ;;  %1643 = vmatpush.xpose.msk.msra.mxu1 %vm856_vm6, %v1820_v48  ;;  %vm73_vm15 = vcmp.ge.f32.partialorder %v1961_v10, 0.0  ;;  %vm80_vm6 = vmand %vm72_vm2, %vm76_vm3  ;;  %v1014_v10 = vperm.slane %v1006_v9, 1  ;;  %vm1019_vm2 = vcmp.eq.f32.partialorder %v1015_v6, %v1853_v31  ;;  %vm1020_vm3 = vcmp.eq.f32.partialorder %v1016_v7, %v1853_v31 }
  0x49   :  { %1651 = vmatpush.xpose.msk.msra.mxu3 %vm858_vm4, %v1820_v48  ;;  %vm94_vm4 = vcmp.ne.s32.totalorder %v92_v0, 0  ;;  %vm81_vm5 = vmand %vm73_vm15, %vm77_vm1  ;;  %vm1021_vm15 = vcmp.eq.f32.partialorder %v1013_v8, %v1851_v30  ;;  %v1182_v27 = vperm.slane %v1174_v18, 2 }
  0x4a   :  { %vm1022_vm1 = vcmp.eq.f32.partialorder %v1014_v10, %v1851_v30 }
  0x4b   :  { %1648 = vmatpush.xpose.msk.msra.mxu2 %vm853_vm7, %v1820_v48  ;;  %1640 = vmatpush.xpose.msk.msra.mxu0 %vm851_vm9, %v1820_v48  ;;  %vm647_vm7 = vcmp.eq.f32.partialorder %v643_v29, %v1853_v31  ;;  %vm648_vm9 = vcmp.eq.f32.partialorder %v644_v4, %v1853_v31 }
  0x4c   :  { %1644 = vmatpush.xpose.msk.msra.mxu1 %vm852_vm10, %v1820_v48  ;;  %vm646_vm10 = vcmp.eq.f32.partialorder %v642_v5, %v1853_v31 }
  0x4d   :  { %1652 = vmatpush.xpose.msk.msra.mxu3 %vm854_vm8, %v1820_v48  ;;  %1578 = vmatmul.msk.f32.gmra.mxu0 %vm483_vm12, %v1820_v48  ;;  %vm645_vm8 = vcmp.eq.f32.partialorder %v641_v3, %v1853_v31  ;;  %vm1023_vm12 = vcmp.eq.f32.partialorder %v1015_v6, %v1851_v30 }
  0x4e   :  { %1586 = vmatmul.msk.f32.gmra.mxu2 %vm485_vm11, %v1820_v48  ;;  %1582 = vmatmul.msk.f32.gmra.mxu1 %vm484_vm14, %v1820_v48  ;;  %vm98_vm11 = vmand %vm81_vm5, %vm94_vm4  ;;  %vm1018_vm5 = vcmp.eq.f32.partialorder %v1014_v10, %v1853_v31 }
  0x4f   :  { %vm97_vm14 = vmand %vm80_vm6, %vm94_vm4  ;;  %v2104_v11 = vsel %vm98_vm11, %v122_v37, -1.0  ;;  %vm1017_vm4 = vcmp.eq.f32.partialorder %v1013_v8, %v1853_v31  ;;  %vm651_vm6 = vcmp.eq.f32.partialorder %v643_v29, %v1851_v30  ;;  %v1339_v37 = vperm.slane %v2031_v45, 3 }
  0x50   :  { %1590 = vmatmul.msk.f32.gmra.mxu3 %vm486_vm13, %v1820_v48  ;;  %vm1024_vm13 = vcmp.eq.f32.partialorder %v1016_v7, %v1851_v30  ;;  %v2110_v12 = vsel %vm97_vm14, %v121_v40, -1.0  ;;  %v803_v13 = vperm.slane %v2104_v11, 0  ;;  %v804_v15 = vperm.slane %v2104_v11, 4 }
  0x51   :  { %v801_v14 = vperm.slane %v2110_v12, 0  ;;  %v802_v16 = vperm.slane %v2110_v12, 4  ;;  %vm1189_vm14 = vcmp.eq.f32.partialorder %v1181_v25, %v1851_v30  ;;  %v971_v33 = vperm.slane %v2104_v11, 1 }
  0x52   :  { %v811_v21 = vperm.slane %v803_v13, 0  ;;  %v812_v23 = vperm.slane %v804_v15, 0  ;;  %v969_v34 = vperm.slane %v2110_v12, 1  ;;  %v972_v35 = vperm.slane %v2104_v11, 5 }
  0x53   :  { %v809_v22 = vperm.slane %v801_v14, 0  ;;  %v810_v24 = vperm.slane %v802_v16, 0  ;;  %v970_v36 = vperm.slane %v2110_v12, 5  ;;  %v1338_v40 = vperm.slane %v2037_v50, 7 }
  0x54   :  { %v979_v41 = vperm.slane %v971_v33, 1  ;;  %v977_v42 = vperm.slane %v969_v34, 1  ;;  %v980_v43 = vperm.slane %v972_v35, 1  ;;  %v1347_v46 = vperm.slane %v1339_v37, 3 }
  0x55   :  { %1609 = vmatmul.msk.f32.vlgmr.msrb.gmra.mxu0 %vm645_vm8, %v1820_v48  ;;  %vm652_vm8 = vcmp.eq.f32.partialorder %v644_v4, %v1851_v30  ;;  %vm813_vm11 = vcmp.eq.f32.partialorder %v809_v22, %v1853_v31  ;;  %v978_v44 = vperm.slane %v970_v36, 1  ;;  %v1346_v45 = vperm.slane %v1338_v40, 3 }
  0x56   :  { %1617 = vmatmul.msk.f32.vlgmr.msrb.gmra.mxu2 %vm647_vm7, %v1820_v48  ;;  %1613 = vmatmul.msk.f32.vlgmr.msrb.gmra.mxu1 %vm646_vm10, %v1820_v48  ;;  %vm649_vm7 = vcmp.eq.f32.partialorder %v641_v3, %v1851_v30  ;;  %vm815_vm10 = vcmp.eq.f32.partialorder %v811_v21, %v1853_v31  ;;  %v1137_v50 = vperm.slane %v2104_v11, 2  ;;  %v1135_v51 = vperm.slane %v2110_v12, 2 }
  0x57   :  { %1679 = vmatpush.xpose.msk.msrb.mxu2 %vm1023_vm12, %v1820_v48  ;;  %1671 = vmatpush.xpose.msk.msrb.mxu0 %vm1021_vm15, %v1820_v48  ;;  %vm816_vm12 = vcmp.eq.f32.partialorder %v812_v23, %v1853_v31  ;;  %vm1190_vm15 = vcmp.eq.f32.partialorder %v1182_v27, %v1851_v30  ;;  %v1138_v52 = vperm.slane %v2104_v11, 6  ;;  %v1136_v53 = vperm.slane %v2110_v12, 6 }
  0x58   :  { %1621 = vmatmul.msk.f32.vlgmr.msrb.gmra.mxu3 %vm648_vm9, %v1820_v48  ;;  %1675 = vmatpush.xpose.msk.msrb.mxu1 %vm1022_vm1, %v1820_v48  ;;  %vm650_vm9 = vcmp.eq.f32.partialorder %v642_v5, %v1851_v30  ;;  %vm1187_vm1 = vcmp.eq.f32.partialorder %v1179_v28, %v1851_v30  ;;  %v1145_v54 = vperm.slane %v1137_v50, 2  ;;  %v1143_v55 = vperm.slane %v1135_v51, 2 }
  0x59   :  { %1683 = vmatpush.xpose.msk.msrb.mxu3 %vm1024_vm13, %v1820_v48  ;;  %vm814_vm13 = vcmp.eq.f32.partialorder %v810_v24, %v1853_v31  ;;  %v1146_v56 = vperm.slane %v1138_v52, 2  ;;  %v1144_v57 = vperm.slane %v1136_v53, 2  ;;  %v1303_v58 = vperm.slane %v2104_v11, 3 }
  0x5a   :  { %v1301_v59 = vperm.slane %v2110_v12, 3  ;;  %v1304_v60 = vperm.slane %v2104_v11, 7  ;;  %v1302_v61 = vperm.slane %v2110_v12, 7 }
  0x5b   :  { %1680 = vmatpush.xpose.msk.msrb.mxu2 %vm1019_vm2, %v1820_v48  ;;  %1672 = vmatpush.xpose.msk.msrb.mxu0 %vm1017_vm4, %v1820_v48  ;;  %vm1188_vm2 = vcmp.eq.f32.partialorder %v1180_v32, %v1851_v30  ;;  %vm1186_vm4 = vcmp.eq.f32.partialorder %v1182_v27, %v1853_v31  ;;  %v1311_v62 = vperm.slane %v1303_v58, 3 }
  0x5c   :  { %1676 = vmatpush.xpose.msk.msrb.mxu1 %vm1018_vm5, %v1820_v48  ;;  %vm1183_vm5 = vcmp.eq.f32.partialorder %v1179_v28, %v1853_v31  ;;  %v1309_v63 = vperm.slane %v1301_v59, 3  ;;  %v1312_v0 = vperm.slane %v1304_v60, 3  ;;  %v1310_v1 = vperm.slane %v1302_v61, 3 }
  0x5d   :  { %1684 = vmatpush.xpose.msk.msrb.mxu3 %vm1020_vm3, %v1820_v48  ;;  %1610 = vmatmul.msk.f32.gmra.mxu0 %vm649_vm7, %v1820_v48  ;;  %vm1185_vm3 = vcmp.eq.f32.partialorder %v1181_v25, %v1853_v31  ;;  %vm819_vm7 = vcmp.eq.f32.partialorder %v811_v21, %v1851_v30 }
  0x5e   :  { %1618 = vmatmul.msk.f32.gmra.mxu2 %vm651_vm6, %v1820_v48  ;;  %1614 = vmatmul.msk.f32.gmra.mxu1 %vm650_vm9, %v1820_v48  ;;  %vm1184_vm6 = vcmp.eq.f32.partialorder %v1180_v32, %v1853_v31  ;;  %vm820_vm9 = vcmp.eq.f32.partialorder %v812_v23, %v1851_v30 }
  0x60   :  { %1622 = vmatmul.msk.f32.gmra.mxu3 %vm652_vm8, %v1820_v48  ;;  %vm817_vm8 = vcmp.eq.f32.partialorder %v809_v22, %v1851_v30 }
  0x65   :  { %1641 = vmatmul.msk.f32.vlgmr.msra.gmra.mxu0 %vm813_vm11, %v1820_v48  ;;  %vm983_vm11 = vcmp.eq.f32.partialorder %v979_v41, %v1853_v31 }
  0x66   :  { %1649 = vmatmul.msk.f32.vlgmr.msra.gmra.mxu2 %vm815_vm10, %v1820_v48  ;;  %1645 = vmatmul.msk.f32.vlgmr.msra.gmra.mxu1 %vm814_vm13, %v1820_v48  ;;  %vm818_vm10 = vcmp.eq.f32.partialorder %v810_v24, %v1851_v30  ;;  %vm984_vm13 = vcmp.eq.f32.partialorder %v980_v43, %v1853_v31 }
  0x67   :  { %1711 = vmatpush.xpose.msk.msra.mxu2 %vm1189_vm14, %v1820_v48  ;;  %1703 = vmatpush.xpose.msk.msra.mxu0 %vm1187_vm1, %v1820_v48  ;;  %vm982_vm14 = vcmp.eq.f32.partialorder %v978_v44, %v1853_v31  ;;  %vm1356_vm1 = vcmp.eq.f32.partialorder %v1348_v47, %v1851_v30 }
  0x68   :  { %1653 = vmatmul.msk.f32.vlgmr.msra.gmra.mxu3 %vm816_vm12, %v1820_v48  ;;  %1707 = vmatpush.xpose.msk.msra.mxu1 %vm1188_vm2, %v1820_v48  ;;  %vm981_vm12 = vcmp.eq.f32.partialorder %v977_v42, %v1853_v31  ;;  %vm1353_vm2 = vcmp.eq.f32.partialorder %v1345_v49, %v1851_v30 }
  0x69   :  { %1715 = vmatpush.xpose.msk.msra.mxu3 %vm1190_vm15, %v1820_v48  ;;  %vm1355_vm15 = vcmp.eq.f32.partialorder %v1347_v46, %v1851_v30 }
  0x6b   :  { %1712 = vmatpush.xpose.msk.msra.mxu2 %vm1185_vm3, %v1820_v48  ;;  %1704 = vmatpush.xpose.msk.msra.mxu0 %vm1183_vm5, %v1820_v48  ;;  %vm1354_vm3 = vcmp.eq.f32.partialorder %v1346_v45, %v1851_v30  ;;  %vm1352_vm5 = vcmp.eq.f32.partialorder %v1348_v47, %v1853_v31 }
  0x6c   :  { %1708 = vmatpush.xpose.msk.msra.mxu1 %vm1184_vm6, %v1820_v48  ;;  %vm1349_vm6 = vcmp.eq.f32.partialorder %v1345_v49, %v1853_v31 }
  0x6d   :  { %1716 = vmatpush.xpose.msk.msra.mxu3 %vm1186_vm4, %v1820_v48  ;;  %1642 = vmatmul.msk.f32.gmra.mxu0 %vm817_vm8, %v1820_v48  ;;  %vm1351_vm4 = vcmp.eq.f32.partialorder %v1347_v46, %v1853_v31  ;;  %vm987_vm8 = vcmp.eq.f32.partialorder %v979_v41, %v1851_v30 }
  0x6e   :  { %1650 = vmatmul.msk.f32.gmra.mxu2 %vm819_vm7, %v1820_v48  ;;  %1646 = vmatmul.msk.f32.gmra.mxu1 %vm818_vm10, %v1820_v48  ;;  %vm1350_vm7 = vcmp.eq.f32.partialorder %v1346_v45, %v1853_v31  ;;  %vm988_vm10 = vcmp.eq.f32.partialorder %v980_v43, %v1851_v30 }
  0x70   :  { %1654 = vmatmul.msk.f32.gmra.mxu3 %vm820_vm9, %v1820_v48  ;;  %vm985_vm9 = vcmp.eq.f32.partialorder %v977_v42, %v1851_v30 }
  0x75   :  { %1673 = vmatmul.msk.f32.vlgmr.msrb.gmra.mxu0 %vm981_vm12, %v1820_v48  ;;  %vm1149_vm12 = vcmp.eq.f32.partialorder %v1145_v54, %v1853_v31 }
  0x76   :  { %1681 = vmatmul.msk.f32.vlgmr.msrb.gmra.mxu2 %vm983_vm11, %v1820_v48  ;;  %1677 = vmatmul.msk.f32.vlgmr.msrb.gmra.mxu1 %vm982_vm14, %v1820_v48  ;;  %vm986_vm11 = vcmp.eq.f32.partialorder %v978_v44, %v1851_v30  ;;  %vm1150_vm14 = vcmp.eq.f32.partialorder %v1146_v56, %v1853_v31 }
  0x77   :  { %1743 = vmatpush.xpose.msk.msrb.mxu2 %vm1355_vm15, %v1820_v48  ;;  %1735 = vmatpush.xpose.msk.msrb.mxu0 %vm1353_vm2, %v1820_v48  ;;  %vm1148_vm15 = vcmp.eq.f32.partialorder %v1144_v57, %v1853_v31  ;;  %vm1151_vm2 = vcmp.eq.f32.partialorder %v1143_v55, %v1851_v30 }
  0x78   :  { %1685 = vmatmul.msk.f32.vlgmr.msrb.gmra.mxu3 %vm984_vm13, %v1820_v48  ;;  %1739 = vmatpush.xpose.msk.msrb.mxu1 %vm1354_vm3, %v1820_v48  ;;  %vm1147_vm13 = vcmp.eq.f32.partialorder %v1143_v55, %v1853_v31  ;;  %vm1154_vm3 = vcmp.eq.f32.partialorder %v1146_v56, %v1851_v30 }
  0x79   :  { %1747 = vmatpush.xpose.msk.msrb.mxu3 %vm1356_vm1, %v1820_v48  ;;  %vm1153_vm1 = vcmp.eq.f32.partialorder %v1145_v54, %v1851_v30 }
  0x7b   :  { %1744 = vmatpush.xpose.msk.msrb.mxu2 %vm1351_vm4, %v1820_v48  ;;  %1736 = vmatpush.xpose.msk.msrb.mxu0 %vm1349_vm6, %v1820_v48  ;;  %vm1152_vm4 = vcmp.eq.f32.partialorder %v1144_v57, %v1851_v30  ;;  %vm1313_vm6 = vcmp.eq.f32.partialorder %v1309_v63, %v1853_v31 }
  0x7c   :  { %1740 = vmatpush.xpose.msk.msrb.mxu1 %vm1350_vm7, %v1820_v48  ;;  %vm1316_vm7 = vcmp.eq.f32.partialorder %v1312_v0, %v1853_v31 }
  0x7d   :  { %1748 = vmatpush.xpose.msk.msrb.mxu3 %vm1352_vm5, %v1820_v48  ;;  %1674 = vmatmul.msk.f32.gmra.mxu0 %vm985_vm9, %v1820_v48  ;;  %vm1315_vm5 = vcmp.eq.f32.partialorder %v1311_v62, %v1853_v31  ;;  %vm1319_vm9 = vcmp.eq.f32.partialorder %v1311_v62, %v1851_v30 }
  0x7e   :  { %1682 = vmatmul.msk.f32.gmra.mxu2 %vm987_vm8, %v1820_v48  ;;  %1678 = vmatmul.msk.f32.gmra.mxu1 %vm986_vm11, %v1820_v48  ;;  %vm1314_vm8 = vcmp.eq.f32.partialorder %v1310_v1, %v1853_v31  ;;  %vm1320_vm11 = vcmp.eq.f32.partialorder %v1312_v0, %v1851_v30 }
  0x80   :  { %1686 = vmatmul.msk.f32.gmra.mxu3 %vm988_vm10, %v1820_v48  ;;  %vm1317_vm10 = vcmp.eq.f32.partialorder %v1309_v63, %v1851_v30 }
  0x85   :  { %1705 = vmatmul.msk.f32.vlgmr.msra.gmra.mxu0 %vm1147_vm13, %v1820_v48 }
  0x86   :  { %1713 = vmatmul.msk.f32.vlgmr.msra.gmra.mxu2 %vm1149_vm12, %v1820_v48  ;;  %1709 = vmatmul.msk.f32.vlgmr.msra.gmra.mxu1 %vm1148_vm15, %v1820_v48  ;;  %vm1318_vm12 = vcmp.eq.f32.partialorder %v1310_v1, %v1851_v30 }
  0x88   :  { %1717 = vmatmul.msk.f32.vlgmr.msra.gmra.mxu3 %vm1150_vm14, %v1820_v48 }
  0x8d   :  { %1706 = vmatmul.msk.f32.gmra.mxu0 %vm1151_vm2, %v1820_v48 }
  0x8e   :  { %1714 = vmatmul.msk.f32.gmra.mxu2 %vm1153_vm1, %v1820_v48  ;;  %1710 = vmatmul.msk.f32.gmra.mxu1 %vm1152_vm4, %v1820_v48 }
  0x90   :  { %1718 = vmatmul.msk.f32.gmra.mxu3 %vm1154_vm3, %v1820_v48 }
  0x95   :  { %1737 = vmatmul.msk.f32.vlgmr.msrb.gmra.mxu0 %vm1313_vm6, %v1820_v48 }
  0x96   :  { %1745 = vmatmul.msk.f32.vlgmr.msrb.gmra.mxu2 %vm1315_vm5, %v1820_v48  ;;  %1741 = vmatmul.msk.f32.vlgmr.msrb.gmra.mxu1 %vm1314_vm8, %v1820_v48 }
  0x98   :  { %1749 = vmatmul.msk.f32.vlgmr.msrb.gmra.mxu3 %vm1316_vm7, %v1820_v48 }
  0x9d   :  { %1738 = vmatmul.msk.f32.gmra.mxu0 %vm1317_vm10, %v1820_v48 }
  0x9e   :  { %1746 = vmatmul.msk.f32.gmra.mxu2 %vm1319_vm9, %v1820_v48  ;;  %1742 = vmatmul.msk.f32.gmra.mxu1 %vm1318_vm12, %v1820_v48 }
  0xa0   :  { %1750 = vmatmul.msk.f32.gmra.mxu3 %vm1320_vm11, %v1820_v48 }
  0xa2   :  { %v300_v31 = vpop.f32.mrf.mxu0 }
  0xa3   :  { %v323_v2 = vpop.f32.mrf.mxu1 }
  0xa4   :  { %v324_v26 = vadd.f32 %v323_v2, %v300_v31 }
  0xa8   :  { %v346_v9 = vpop.f32.mrf.mxu2 }
  0xa9   :  { %v347_v29 = vadd.f32 %v346_v9, %v324_v26 }
  0xaa   :  { %v303_v4 = vpop.f32.mrf.mxu0 }
  0xab   :  { %v369_v3 = vpop.f32.mrf.mxu3  ;;  %v326_v6 = vpop.f32.mrf.mxu1 }
  0xac   :  { %v370_v5 = vadd.f32 %v369_v3, %v347_v29  ;;  %v327_v7 = vadd.f32 %v326_v6, %v303_v4 }
  0xb0   :  { %v349_v8 = vpop.f32.mrf.mxu2 }
  0xb1   :  { %v350_v30 = vadd.f32 %v349_v8, %v327_v7 }
  0xb2   :  { %v392_v11 = vpop.f32.mrf.mxu0 }
  0xb3   :  { %v372_v10 = vpop.f32.mrf.mxu3  ;;  %v393_v13 = vadd.f32 %v392_v11, %v370_v5  ;;  %v415_v14 = vpop.f32.mrf.mxu1 }
  0xb4   :  { %v373_v12 = vadd.f32 %v372_v10, %v350_v30 }
  0xb5   :  { %v416_v15 = vadd.f32 %v415_v14, %v393_v13 }
  0xb8   :  { %v438_v16 = vpop.f32.mrf.mxu2 }
  0xb9   :  { %v439_v48 = vadd.f32 %v438_v16, %v416_v15 }
  0xba   :  { %v395_v18 = vpop.f32.mrf.mxu0 }
  0xbb   :  { %v461_v17 = vpop.f32.mrf.mxu3  ;;  %v396_v19 = vadd.f32 %v395_v18, %v373_v12  ;;  %v418_v21 = vpop.f32.mrf.mxu1 }
  0xbc   :  { %v462_v20 = vadd.f32 %v461_v17, %v439_v48 }
  0xbd   :  { %v419_v22 = vadd.f32 %v418_v21, %v396_v19 }
  0xc1   :  { %v441_v23 = vpop.f32.mrf.mxu2 }
  0xc2   :  { %v442_v24 = vadd.f32 %v441_v23, %v419_v22  ;;  %v556_v27 = vpop.f32.mrf.mxu0 }
  0xc3   :  { %v464_v25 = vpop.f32.mrf.mxu3  ;;  %v579_v32 = vpop.f32.mrf.mxu1 }
  0xc4   :  { %v465_v28 = vadd.f32 %v464_v25, %v442_v24  ;;  %v580_v33 = vadd.f32 %v579_v32, %v556_v27 }
  0xc9   :  { %v602_v34 = vpop.f32.mrf.mxu2 }
  0xca   :  { %v603_v35 = vadd.f32 %v602_v34, %v580_v33  ;;  %v559_v37 = vpop.f32.mrf.mxu0 }
  0xcb   :  { %v625_v36 = vpop.f32.mrf.mxu3  ;;  %v582_v39 = vpop.f32.mrf.mxu1 }
  0xcc   :  { %v626_v38 = vadd.f32 %v625_v36, %v603_v35  ;;  %v583_v40 = vadd.f32 %v582_v39, %v559_v37 }
  0xce   :  { %v631_v41 = vadd.f32 %v626_v38, %v462_v20 }
  0xd1   :  { %v605_v42 = vpop.f32.mrf.mxu2 }
  0xd2   :  { %v606_v43 = vadd.f32 %v605_v42, %v583_v40  ;;  %v722_v46 = vpop.f32.mrf.mxu0 }
  0xd3   :  { %v628_v44 = vpop.f32.mrf.mxu3  ;;  %v745_v49 = vpop.f32.mrf.mxu1 }
  0xd4   :  { %v629_v47 = vadd.f32 %v628_v44, %v606_v43  ;;  %v746_v6 = vadd.f32 %v745_v49, %v722_v46 }
  0xd6   :  { %v2250_v45 = vadd.f32 %v629_v47, %v465_v28 }
  0xd9   :  { %v768_v50 = vpop.f32.mrf.mxu2 }
  0xda   :  { %v725_v52 = vpop.f32.mrf.mxu0  ;;  %v769_v12 = vadd.f32 %v768_v50, %v746_v6 }
  0xdb   :  { %v791_v51 = vpop.f32.mrf.mxu3  ;;  %v748_v53 = vpop.f32.mrf.mxu1 }
  0xdc   :  { %v792_v16 = vadd.f32 %v791_v51, %v769_v12  ;;  %v749_v17 = vadd.f32 %v748_v53, %v725_v52  ;;  %v1467_v52 = vld [vmem:[#allocation5] sm:$0xff] }
  0xde   :  { %v797_v25 = vadd.f32 %v792_v16, %v631_v41 }
  0xe1   :  { %v771_v54 = vpop.f32.mrf.mxu2 }
  0xe2   :  { %v892_v56 = vpop.f32.mrf.mxu0  ;;  %v772_v27 = vadd.f32 %v771_v54, %v749_v17 }
  0xe3   :  { %v794_v55 = vpop.f32.mrf.mxu3  ;;  %v915_v57 = vpop.f32.mrf.mxu1 }
  0xe4   :  { %v916_v10 = vadd.f32 %v915_v57, %v892_v56  ;;  %v795_v39 = vadd.f32 %v794_v55, %v772_v27 }
  0xe6   :  { %v798_v53 = vadd.f32 %v795_v39, %v2250_v45  ;;  %v1468_v45 = vld [vmem:[#allocation5 + $0x8] sm:$0xff] }
  0xe9   :  { %v938_v58 = vpop.f32.mrf.mxu2 }
  0xea   :  { %v895_v60 = vpop.f32.mrf.mxu0  ;;  %v939_v14 = vadd.f32 %v938_v58, %v916_v10 }
  0xeb   :  { %v961_v59 = vpop.f32.mrf.mxu3  ;;  %v918_v61 = vpop.f32.mrf.mxu1 }
  0xec   :  { %v962_v21 = vadd.f32 %v961_v59, %v939_v14  ;;  %v919_v22 = vadd.f32 %v918_v61, %v895_v60 }
  0xee   :  { %v967_v34 = vadd.f32 %v962_v21, %v797_v25 }
  0xf1   :  { %v941_v62 = vpop.f32.mrf.mxu2 }
  0xf2   :  { %v1058_v0 = vpop.f32.mrf.mxu0  ;;  %v942_v35 = vadd.f32 %v941_v62, %v919_v22 }
  0xf3   :  { %v964_v63 = vpop.f32.mrf.mxu3  ;;  %v1081_v1 = vpop.f32.mrf.mxu1 }
  0xf4   :  { %v1082_v13 = vadd.f32 %v1081_v1, %v1058_v0  ;;  %v965_v47 = vadd.f32 %v964_v63, %v942_v35 }
  0xf6   :  { %v968_v58 = vadd.f32 %v965_v47, %v798_v53 }
  0xf9   :  { %v1104_v31 = vpop.f32.mrf.mxu2 }
  0xfa   :  { %v1061_v26 = vpop.f32.mrf.mxu0  ;;  %v1105_v18 = vadd.f32 %v1104_v31, %v1082_v13 }
  0xfb   :  { %v1127_v2 = vpop.f32.mrf.mxu3  ;;  %v1084_v9 = vpop.f32.mrf.mxu1 }
  0xfc   :  { %v1128_v28 = vadd.f32 %v1127_v2, %v1105_v18  ;;  %v1085_v32 = vadd.f32 %v1084_v9, %v1061_v26 }
  0xfe   :  { %v1133_v40 = vadd.f32 %v1128_v28, %v967_v34 }
 0x101   :  { %v1107_v29 = vpop.f32.mrf.mxu2 }
 0x102   :  { %v1224_v4 = vpop.f32.mrf.mxu0  ;;  %v1108_v42 = vadd.f32 %v1107_v29, %v1085_v32 }
 0x103   :  { %v1130_v3 = vpop.f32.mrf.mxu3  ;;  %v1247_v5 = vpop.f32.mrf.mxu1 }
 0x104   :  { %v1248_v15 = vadd.f32 %v1247_v5, %v1224_v4  ;;  %v1131_v54 = vadd.f32 %v1130_v3, %v1108_v42 }
 0x106   :  { %v1134_v61 = vadd.f32 %v1131_v54, %v968_v58 }
 0x109   :  { %v1270_v7 = vpop.f32.mrf.mxu2 }
 0x10a   :  { %v1227_v30 = vpop.f32.mrf.mxu0  ;;  %v1271_v23 = vadd.f32 %v1270_v7, %v1248_v15 }
 0x10b   :  { %v1293_v8 = vpop.f32.mrf.mxu3  ;;  %v1250_v11 = vpop.f32.mrf.mxu1 }
 0x10c   :  { %v1294_v36 = vadd.f32 %v1293_v8, %v1271_v23  ;;  %v1251_v37 = vadd.f32 %v1250_v11, %v1227_v30 }
 0x10e   :  { %v1299_v49 = vadd.f32 %v1294_v36, %v1133_v40 }
 0x111   :  { %v1273_v48 = vpop.f32.mrf.mxu2 }
 0x112   :  { %v1390_v20 = vpop.f32.mrf.mxu0  ;;  %v1274_v50 = vadd.f32 %v1273_v48, %v1251_v37 }
 0x113   :  { %v1296_v19 = vpop.f32.mrf.mxu3  ;;  %v1413_v24 = vpop.f32.mrf.mxu1 }
 0x114   :  { %v1414_v33 = vadd.f32 %v1413_v24, %v1390_v20  ;;  %v1297_v59 = vadd.f32 %v1296_v19, %v1274_v50 }
 0x116   :  { %v1300_v63 = vadd.f32 %v1297_v59, %v1134_v61 }
 0x119   :  { %v1436_v38 = vpop.f32.mrf.mxu2 }
 0x11a   :  { %v1437_v43 = vadd.f32 %v1436_v38, %v1414_v33  ;;  %v1393_v46 = vpop.f32.mrf.mxu0 }
 0x11b   :  { %v1459_v44 = vpop.f32.mrf.mxu3  ;;  %v1416_v41 = vpop.f32.mrf.mxu1 }
 0x11c   :  { %v1460_v51 = vadd.f32 %v1459_v44, %v1437_v43  ;;  %v1417_v57 = vadd.f32 %v1416_v41, %v1393_v46 }
 0x11e   :  { %v1465_v56 = vadd.f32 %v1460_v51, %v1299_v49 }
 0x120   :  { %v1469_v60 = vadd.f32 %v1467_v52, %v1465_v56 }
 0x121   :  { %v1439_v55 = vpop.f32.mrf.mxu2 }
 0x122   :  { %1472 = vst.msk [vmem:[#allocation5] sm:$0xff] %vm49_vm0, %v1469_v60  ;;  %v1440_v62 = vadd.f32 %v1439_v55, %v1417_v57 }
 0x123   :  { %v1462_v0 = vpop.f32.mrf.mxu3 }
 0x124   :  { %v1463_v1 = vadd.f32 %v1462_v0, %v1440_v62 }
 0x126   :  { %v1466_v31 = vadd.f32 %v1463_v1, %v1300_v63 }
 0x128   :  { %v1470_v2 = vadd.f32 %v1468_v45, %v1466_v31 }
 0x12a   :  { %1473 = vst.msk [vmem:[#allocation5 + $0x8] sm:$0xff] %vm49_vm0, %v1470_v2 }
 0x12b   :  { %1486 = dma.vmem_to_hbm [thread:$0]  %s1479_s13, 256, %s1481_s16, [#allocation4], %s1823_s17, %s1823_s17, %s1824_s18  }
 0x12c   :  { %1812 = dma.done.wait [#allocation4], 256  }
 0x12d   :  { %1813 = vsyncadd [#allocation4], 4294967040 }
 0x12e   :  { %1491 = vsyncpa [#allocation3], 1 }
 0x12f   :  { %1492 = vsyncpa [#allocation4], 1 }

</bundles_post_ra>
